<compile_context>
chip_gen: v7x
topology: tpu7x:2x2x1
jax: 0.10.0
libtpu: 0.0.40
codegen_flags: <defaults>
</compile_context>

<pallas_src>
import functools

import jax
import jax.numpy as jnp
from jax.experimental import pallas as pl
from jax.experimental.pallas import tpu as pltpu

_SUBLANE = 8


def _round_up(v, m):
    return ((v + m - 1) // m) * m


def _block_spec(block_shape, index_map, buffer_count=None):
    """BlockSpec with optional pipeline_mode; degrades gracefully on older jax."""
    if buffer_count is not None and hasattr(pl, "Buffered"):
        try:
            return pl.BlockSpec(block_shape, index_map,
                                pipeline_mode=pl.Buffered(buffer_count))
        except TypeError:
            pass
    return pl.BlockSpec(block_shape, index_map)


def _mlp_kernel(x_ref, w1_ref, b1_ref, w2_ref, b2_ref, o_ref):
    # Cast the streamed f32 x tile to bf16 on the VPU (free in a mem-bound
    # kernel), so the first matmul is a single-pass bf16 MXU op with f32 acc.
    x = x_ref[...].astype(jnp.bfloat16)
    h = jnp.dot(x, w1_ref[...], preferred_element_type=jnp.float32)
    h = jnp.maximum(h + b1_ref[...], 0.0)                 # bias + ReLU in f32 (VPU)
    # Second matmul also bf16 (single MXU pass); accumulate in f32.
    y = jnp.dot(h.astype(jnp.bfloat16), w2_ref[...],
                preferred_element_type=jnp.float32)
    o_ref[...] = (y + b2_ref[...]).astype(o_ref.dtype)


@functools.partial(jax.jit, static_argnames=("block_b",))
def image_encoder(x, w1, b1, w2, b2, *, block_b=1024):
    """Forward pass: relu(x @ W1 + b1) @ W2 + b2.

    x:  [B, D_in] float32 (streamed; bf16 cast happens in-kernel)
    w1: [D_in, H], b1: [H] or [1, H]
    w2: [H, E],    b2: [E] or [1, E]
    Returns [B, E] float32.
    """
    B, D_in = x.shape
    H = w1.shape[1]
    E = w2.shape[1]

    x = x.astype(jnp.float32)            # streamed as-is: no host pad/cast HBM pass
    w1 = w1.astype(jnp.bfloat16)         # resident, fetched once (tiny one-time cast)
    w2 = w2.astype(jnp.bfloat16)
    b1 = b1.reshape(1, H).astype(jnp.float32)
    b2 = b2.reshape(1, E).astype(jnp.float32)

    # Batch tile: big enough to amortize the ~0.35 us/step pipeline overhead,
    # capped so the grid keeps >= 2 steps (megacore sharding on v7x) and
    # sublane-aligned. Partial trailing block (B % bb != 0) is masked by Pallas.
    half_b = _round_up(max(1, (B + 1) // 2), _SUBLANE)
    bb = max(_SUBLANE, min(block_b, half_b))
    grid = (pl.cdiv(B, bb),)

    cost = pl.CostEstimate(
        flops=2 * B * (D_in * H + H * E),
        transcendentals=0,
        bytes_accessed=(x.size * 4 + w1.size * 2 + b1.size * 4
                        + w2.size * 2 + b2.size * 4 + B * E * 4),
    )

    return pl.pallas_call(
        _mlp_kernel,
        out_shape=jax.ShapeDtypeStruct((B, E), jnp.float32),
        grid_spec=pltpu.PrefetchScalarGridSpec(
            num_scalar_prefetch=0,
            grid=grid,
            in_specs=[
                # streamed x tile: full last dim (= array dim) is legal, no padding
                pl.BlockSpec((bb, D_in), lambda i: (i, 0)),
                # resident operands: constant index_map -> fetched once, single-buffered
                _block_spec((D_in, H), lambda i: (0, 0), 1),   # W1 (bf16)
                _block_spec((1, H), lambda i: (0, 0), 1),      # b1 (f32)
                _block_spec((H, E), lambda i: (0, 0), 1),      # W2 (bf16)
                _block_spec((1, E), lambda i: (0, 0), 1),      # b2 (f32)
            ],
            out_specs=pl.BlockSpec((bb, E), lambda i: (i, 0)),
        ),
        compiler_params=pltpu.CompilerParams(
            dimension_semantics=("parallel",),
        ),
        cost_estimate=cost,
    )(x, w1, b1, w2, b2)


def init_params(key, input_dim=784, hidden_dim=128, embedding_dim=64,
                dtype=jnp.float32):
    """Deterministic init mirroring nn.Linear's U(-1/sqrt(fan_in), +1/sqrt(fan_in))."""
    k1, k2, k3, k4 = jax.random.split(key, 4)
    lim1 = 1.0 / (input_dim ** 0.5)
    lim2 = 1.0 / (hidden_dim ** 0.5)
    # Stored as [in, out] (transposed relative to PyTorch's [out, in]).
    w1 = jax.random.uniform(k1, (input_dim, hidden_dim), dtype, -lim1, lim1)
    b1 = jax.random.uniform(k2, (1, hidden_dim), dtype, -lim1, lim1)
    w2 = jax.random.uniform(k3, (hidden_dim, embedding_dim), dtype, -lim2, lim2)
    b2 = jax.random.uniform(k4, (1, embedding_dim), dtype, -lim2, lim2)
    return w1, b1, w2, b2


def _reference(x, w1, b1, w2, b2):
    # Mirrors the kernel's bf16 rounding of the matmul operands; math in f32.
    xq = x.astype(jnp.bfloat16).astype(jnp.float32)
    w1q = w1.astype(jnp.bfloat16).astype(jnp.float32)
    h = jnp.maximum(
        jnp.dot(xq, w1q, precision=jax.lax.Precision.HIGHEST) + b1.reshape(1, -1),
        0.0)
    hq = h.astype(jnp.bfloat16).astype(jnp.float32)
    w2q = w2.astype(jnp.bfloat16).astype(jnp.float32)
    return jnp.dot(hq, w2q, precision=jax.lax.Precision.HIGHEST) + b2.reshape(1, -1)


if __name__ == "__main__":
    key = jax.random.PRNGKey(0)
    k_x, k_p = jax.random.split(key)

    B, D_IN, HID, EMB = 32, 784, 128, 64
    x = jax.random.normal(k_x, (B, D_IN), dtype=jnp.float32)
    w1, b1, w2, b2 = init_params(k_p, D_IN, HID, EMB)

    out = jax.block_until_ready(image_encoder(x, w1, b1, w2, b2))
    ref = _reference(x, w1, b1, w2, b2)
    assert out.shape == (B, EMB)
    assert jnp.allclose(out, ref, atol=1e-2, rtol=1e-2), \
        float(jnp.max(jnp.abs(out - ref)))

    # Ragged batch: handled by a partial trailing grid block (no host pad/slice).
    out2 = jax.block_until_ready(image_encoder(x[:19], w1, b1, w2, b2))
    assert out2.shape == (19, EMB)
    assert jnp.allclose(out2, ref[:19], atol=1e-2, rtol=1e-2), \
        float(jnp.max(jnp.abs(out2 - ref[:19])))

    print("KERNEL_OK")
</pallas_src>

<mosaic_0001>
module attributes {stable_mosaic.version = 11 : i64} {
  func.func @_mlp_kernel(%arg0: i32, %arg1: memref<16x784xf32, #tpu.memory_space<vmem>>, %arg2: memref<784x128xbf16, #tpu.memory_space<vmem>>, %arg3: memref<1x128xf32, #tpu.memory_space<vmem>>, %arg4: memref<128x64xbf16, #tpu.memory_space<vmem>>, %arg5: memref<1x64xf32, #tpu.memory_space<vmem>>, %arg6: memref<16x64xf32, #tpu.memory_space<vmem>>) attributes {dimension_semantics = [#tpu.dimension_semantics<parallel>], iteration_bounds = array<i64: 2>, scalar_prefetch = 0 : i64, scratch_operands = 0 : i64, tpu.core_type = #tpu.core_type<tc>, window_params = [{transform_indices = @transform_0, window_bounds = array<i64: 16, 784>}, {pipeline_mode = #tpu.pipeline_mode<synchronous>, transform_indices = @transform_1, window_bounds = array<i64: 784, 128>}, {pipeline_mode = #tpu.pipeline_mode<synchronous>, transform_indices = @transform_2, window_bounds = array<i64: 1, 128>}, {pipeline_mode = #tpu.pipeline_mode<synchronous>, transform_indices = @transform_3, window_bounds = array<i64: 128, 64>}, {pipeline_mode = #tpu.pipeline_mode<synchronous>, transform_indices = @transform_4, window_bounds = array<i64: 1, 64>}, {transform_indices = @transform_5, window_bounds = array<i64: 16, 64>}]} {
    %c0 = arith.constant 0 : index
    %c0_0 = arith.constant 0 : index
    %0 = vector.load %arg1[%c0, %c0_0] : memref<16x784xf32, #tpu.memory_space<vmem>>, vector<16x784xf32>
    %1 = arith.truncf %0 : vector<16x784xf32> to vector<16x784xbf16>
    %c0_1 = arith.constant 0 : index
    %c0_2 = arith.constant 0 : index
    %2 = vector.load %arg2[%c0_1, %c0_2] : memref<784x128xbf16, #tpu.memory_space<vmem>>, vector<784x128xbf16>
    %cst = arith.constant dense<0.000000e+00> : vector<16x128xf32>
    %3 = tpu.matmul %1, %2, %cst {dimension_numbers = #tpu.dot_dimension_numbers<[1], [0], [0], [1], [0, 0, 1, 1], [], []>} : vector<16x784xbf16>, vector<784x128xbf16>, vector<16x128xf32> -> vector<16x128xf32>
    %c0_3 = arith.constant 0 : index
    %c0_4 = arith.constant 0 : index
    %4 = vector.load %arg3[%c0_3, %c0_4] : memref<1x128xf32, #tpu.memory_space<vmem>>, vector<1x128xf32>
    %5 = vector.broadcast %4 : vector<1x128xf32> to vector<16x128xf32>
    %6 = arith.addf %3, %5 : vector<16x128xf32>
    %cst_5 = arith.constant 0.000000e+00 : f32
    %7 = vector.broadcast %cst_5 : f32 to vector<16x128xf32>
    %8 = arith.maximumf %6, %7 : vector<16x128xf32>
    %9 = arith.truncf %8 : vector<16x128xf32> to vector<16x128xbf16>
    %c0_6 = arith.constant 0 : index
    %c0_7 = arith.constant 0 : index
    %10 = vector.load %arg4[%c0_6, %c0_7] : memref<128x64xbf16, #tpu.memory_space<vmem>>, vector<128x64xbf16>
    %cst_8 = arith.constant dense<0.000000e+00> : vector<16x64xf32>
    %11 = tpu.matmul %9, %10, %cst_8 {dimension_numbers = #tpu.dot_dimension_numbers<[1], [0], [0], [1], [0, 0, 1, 1], [], []>} : vector<16x128xbf16>, vector<128x64xbf16>, vector<16x64xf32> -> vector<16x64xf32>
    %c0_9 = arith.constant 0 : index
    %c0_10 = arith.constant 0 : index
    %12 = vector.load %arg5[%c0_9, %c0_10] : memref<1x64xf32, #tpu.memory_space<vmem>>, vector<1x64xf32>
    %13 = vector.broadcast %12 : vector<1x64xf32> to vector<16x64xf32>
    %14 = arith.addf %11, %13 : vector<16x64xf32>
    %c0_11 = arith.constant 0 : index
    %c0_12 = arith.constant 0 : index
    %15 = vector.load %arg6[%c0_11, %c0_12] : memref<16x64xf32, #tpu.memory_space<vmem>>, vector<16x64xf32>
    tpu.vector_store %arg6[%c0_11, %c0_12], %14 {strides = array<i32>} : memref<16x64xf32, #tpu.memory_space<vmem>>, vector<16x64xf32>,
    return
  }
  func.func @transform_0(%arg0: i32) -> (i32, i32) {
    %c0_i32 = arith.constant 0 : i32
    %c0_i32_0 = arith.constant 0 : i32
    return %arg0, %c0_i32 : i32, i32
  }
  func.func @transform_1(%arg0: i32) -> (i32, i32) {
    %c0_i32 = arith.constant 0 : i32
    %c0_i32_0 = arith.constant 0 : i32
    %c0_i32_1 = arith.constant 0 : i32
    return %c0_i32, %c0_i32_0 : i32, i32
  }
  func.func @transform_2(%arg0: i32) -> (i32, i32) {
    %c0_i32 = arith.constant 0 : i32
    %c0_i32_0 = arith.constant 0 : i32
    %c0_i32_1 = arith.constant 0 : i32
    return %c0_i32, %c0_i32_0 : i32, i32
  }
  func.func @transform_3(%arg0: i32) -> (i32, i32) {
    %c0_i32 = arith.constant 0 : i32
    %c0_i32_0 = arith.constant 0 : i32
    %c0_i32_1 = arith.constant 0 : i32
    return %c0_i32, %c0_i32_0 : i32, i32
  }
  func.func @transform_4(%arg0: i32) -> (i32, i32) {
    %c0_i32 = arith.constant 0 : i32
    %c0_i32_0 = arith.constant 0 : i32
    %c0_i32_1 = arith.constant 0 : i32
    return %c0_i32, %c0_i32_0 : i32, i32
  }
  func.func @transform_5(%arg0: i32) -> (i32, i32) {
    %c0_i32 = arith.constant 0 : i32
    %c0_i32_0 = arith.constant 0 : i32
    return %arg0, %c0_i32 : i32, i32
  }
}

</mosaic_0001>

<bundles_post_ra>
// kernel: image_encoder.1
= control target key start
LH: loop header
LB: loop body
LE: loop exit
PB: predicated region body
PF: predicated region fallthrough
CT: control target
= control target key end

     0   :  { %10 = vsyncpa [#allocation3], 0  ;;  %s1696_s0 = inlined_call_operand.vmem [shape: f32[32,784], index: 0, kind: input, shape index: {}]   ;;  %s1697_s1 = inlined_call_operand.vmem [shape: bf16[784,128], index: 1, kind: input, shape index: {}]   ;;  %s1698_s2 = inlined_call_operand.vmem [shape: f32[1,128], index: 2, kind: input, shape index: {}]   ;;  %s1699_s3 = inlined_call_operand.vmem [shape: bf16[128,64], index: 3, kind: input, shape index: {}]   ;;  %s1700_s4 = inlined_call_operand.vmem [shape: f32[1,64], index: 4, kind: input, shape index: {}]   ;;  %s1701_s5 = inlined_call_operand.hbm [shape: f32[32,64], index: 5, kind: output, shape index: {}]  }
   0x1   :  { %12 = vsyncpa [#allocation3 + $0x1], 0  ;;  %s1388_s18 = smov 0   ;;  %s1390_s19 = smov 0  }
   0x2   :  { %s1392_s20 = smov 0   ;;  %s1394_s21 = smov 0  }
   0x3 LB: > { %s1409_s22 = sadd.s32 4294967295, %s1351_s21   ;;  %s1012_s23 = sadd.s32 4294967294, %s1351_s21   ;;  %s1351_s21 = sphi %s1394_s21, %s1707_s21   ;;  %s1347_s20 = sphi %s1392_s20, %s1706_s20   ;;  %s1343_s19 = sphi %s1390_s19, %s1705_s19   ;;  %s1339_s18 = sphi %s1388_s18, %s1704_s18  }
   0x4   : > { %s1413_s24 = sadd.s32 1, %s1351_s21   ;;  %s135_s25 = sadd.s32 1, %s1347_s20 }
   0x5   : > { %s132_s26 = ssub.s32 %s1351_s21, %s1413_s24  ;;  %p145_p0 = scmp.ne.s32.totalorder %s1347_s20, %s1343_s19 }
   0x6   : > { %p133_p1 = scmp.eq.s32.totalorder %s132_s26, 0  ;;  %p146_p2 = scmp.eq.s32.totalorder %s1409_s22, 1 }
   0x7   : > { %p151_p3 = scmp.ne.s32.totalorder %s1343_s19, %s1339_s18  ;;  %p152_p4 = scmp.eq.s32.totalorder %s1012_s23, 1 }
   0x8   : > { %s1424_s27 = scalar_select %p133_p1, %s1347_s20, %s135_s25  }
   0x9   : > { %p1426_p5 = por %p146_p2, %p145_p0  ;;  %p1430_p6 = por %p152_p4, %p151_p3 }
   0xa   : > { %p1015_p7 = scmp.ge.s32.totalorder %s1351_s21, 1  ;;  %p192_p8 = scmp.lt.s32.totalorder %s1351_s21, 3 }
   0xc   : > { %p193_p9 = pnand %p1015_p7, %p192_p8 }
   0xd   : > { %v1232_v0 = vld [vmem:[%s1697_s1 + $0x40] sm:$0xff] (!%p193_p9)   ;;  %v1236_v4 = vld [vmem:[%s1697_s1 + $0x48] sm:$0xff] (!%p193_p9)   ;;  %v1240_v8 = vld [vmem:[%s1697_s1 + $0x50] sm:$0xff] (!%p193_p9)   ;;  %s1017_s17 = sshll.u32 (!%p193_p9), %s1409_s22, 1  ;;  %v1353_v43 = vmov (!%p193_p9), 0.0   ;;  %vm1354_vm0 = vmmov (!%p193_p9), 0  }
   0xe   : > { %196 = sbr.rel (%p193_p9) target bundleno = 534 (0x216), region = 40  ;;  %v1233_v1 = vld [vmem:[%s1697_s1] sm:$0xff] (!%p193_p9)   ;;  %1085 = vmatprep.subr.bf16.mxu0 (!%p193_p9), %v1232_v0  ;;  %v1237_v5 = vld [vmem:[%s1697_s1 + $0x8] sm:$0xff] (!%p193_p9)   ;;  %v1241_v9 = vld [vmem:[%s1697_s1 + $0x10] sm:$0xff] (!%p193_p9)   ;;  %p222_p10 = scmp.lt.s32.totalorder (!%p193_p9), %s1017_s17, 3  ;;  %vm650_vm1 = vcmask (!%p193_p9), 130048  }
   0xf   : > { %v1234_v2 = vld [vmem:[%s1697_s1 + $0xc0] sm:$0xff] (!%p193_p9)   ;;  %1086 = vmatpush3.bf16.msra.mxu0 (!%p193_p9), %v1233_v1  ;;  %v1238_v6 = vld [vmem:[%s1697_s1 + $0xc8] sm:$0xff] (!%p193_p9)   ;;  %v1242_v10 = vld [vmem:[%s1697_s1 + $0xd0] sm:$0xff] (!%p193_p9)   ;;  %s218_s23 = sand.u32 (!%p193_p9), 1, %s1343_s19   ;;  %vm933_vm2 = vcmask (!%p193_p9), 523264   ;;  %s1084_s7 = sshll.u32 (!%p193_p9), %s1409_s22, 8 }
  0x10   : > { %v1235_v3 = vld [vmem:[%s1697_s1 + $0x80] sm:$0xff] (!%p193_p9)   ;;  %1107 = vmatprep.subr.bf16.mxu1 (!%p193_p9), %v1234_v2  ;;  %1087 = vmatprep.subr.bf16.mxu0 (!%p193_p9), %v1236_v4  ;;  %v1239_v7 = vld [vmem:[%s1697_s1 + $0x88] sm:$0xff] (!%p193_p9)   ;;  %v1243_v11 = vld [vmem:[%s1697_s1 + $0x90] sm:$0xff] (!%p193_p9)   ;;  %s1653_s10 = scalar_lea.hbm (!%p193_p9), %s1701_s5, %s1084_s7  ;;  %s1655_s11 = scalar_lea.sflag (!%p193_p9), [#allocation3], %s218_s23 }
  0x11   : > { %1108 = vmatpush3.bf16.msra.mxu1 (!%p193_p9), %v1235_v3  ;;  %v1244_v12 = vld [vmem:[%s1697_s1 + $0x58] sm:$0xff] (!%p193_p9)   ;;  %v1248_v16 = vld [vmem:[%s1697_s1 + $0x60] sm:$0xff] (!%p193_p9)   ;;  %v1252_v20 = vld [vmem:[%s1697_s1 + $0x68] sm:$0xff] (!%p193_p9)   ;;  %s1355_s12 = smov (!%p193_p9), [#allocation2]  }
  0x12   : > { %1109 = vmatprep.subr.bf16.mxu1 (!%p193_p9), %v1238_v6  ;;  %v1245_v13 = vld [vmem:[%s1697_s1 + $0x18] sm:$0xff] (!%p193_p9)   ;;  %v1249_v17 = vld [vmem:[%s1697_s1 + $0x20] sm:$0xff] (!%p193_p9)   ;;  %v1253_v21 = vld [vmem:[%s1697_s1 + $0x28] sm:$0xff] (!%p193_p9)   ;;  %s1293_s13 = sshll.u32 (!%p193_p9), %s1355_s12, 4  ;;  %s1294_s13 = int_to_ptr.vmem [resolvable:$false] %s1293_s13 }
  0x13   : > { %1088 = vmatpush3.bf16.msra.mxu0 (!%p193_p9), %v1237_v5  ;;  %v1246_v14 = vld [vmem:[%s1697_s1 + $0xd8] sm:$0xff] (!%p193_p9)   ;;  %v1250_v18 = vld [vmem:[%s1697_s1 + $0xe0] sm:$0xff] (!%p193_p9)   ;;  %v1254_v22 = vld [vmem:[%s1697_s1 + $0xe8] sm:$0xff] (!%p193_p9)   ;;  %s1295_s14 = scalar_lea.vmem (!%p193_p9), %s1294_s13, 512 }
  0x14   : > { %1089 = vmatprep.subr.bf16.mxu0 (!%p193_p9), %v1240_v8  ;;  %v1247_v15 = vld [vmem:[%s1697_s1 + $0x98] sm:$0xff] (!%p193_p9)   ;;  %v1251_v19 = vld [vmem:[%s1697_s1 + $0xa0] sm:$0xff] (!%p193_p9)   ;;  %v1255_v23 = vld [vmem:[%s1697_s1 + $0xa8] sm:$0xff] (!%p193_p9)  }
  0x15   : > { %1110 = vmatpush3.bf16.msra.mxu1 %v1239_v7  ;;  %s1709_s17 = smov (!%p222_p10, %s1017_s17), 3  ;;  %v1256_v24 = vld [vmem:[%s1697_s1 + $0x70] sm:$0xff]   ;;  %v1260_v28 = vld [vmem:[%s1697_s1 + $0x78] sm:$0xff]   ;;  %v1264_v38 = vld [vmem:[%s1697_s1 + $0x140] sm:$0xff]  }
  0x16   : > { %1111 = vmatprep.subr.bf16.mxu1 %v1242_v10  ;;  %s1188_s9 = smul.u32 56, %s1709_s17  ;;  %v1257_v25 = vld [vmem:[%s1697_s1 + $0x30] sm:$0xff]   ;;  %v1261_v29 = vld [vmem:[%s1697_s1 + $0x38] sm:$0xff]   ;;  %v1265_v42 = vld [vmem:[%s1697_s1 + $0x100] sm:$0xff]   ;;  %s1016_s17 = sshll.u32 %s218_s23, 4 }
  0x17   : > { %1090 = vmatpush3.bf16.msra.mxu0 %v1241_v9  ;;  %v1258_v26 = vld [vmem:[%s1697_s1 + $0xf0] sm:$0xff]   ;;  %v1262_v30 = vld [vmem:[%s1697_s1 + $0xf8] sm:$0xff]   ;;  %v1266_v47 = vld [vmem:[%s1697_s1 + $0x148] sm:$0xff]  }
  0x18   : > { %1091 = vmatprep.subr.bf16.mxu0 %v1244_v12  ;;  %v1259_v27 = vld [vmem:[%s1697_s1 + $0xb0] sm:$0xff]   ;;  %s1527_s26 = scalar_lea.vmem %s1696_s0, %s1188_s9  ;;  %v1263_v34 = vld [vmem:[%s1697_s1 + $0xb8] sm:$0xff]   ;;  %v1267_v48 = vld [vmem:[%s1697_s1 + $0x108] sm:$0xff]  }
  0x19   : > { %1112 = vmatpush3.bf16.msra.mxu1 %v1243_v11  ;;  %v231_v31 = vld [vmem:[%s1527_s26 + $0x8] sm:$0xff]  ;;  %v238_v32 = vld [vmem:[%s1527_s26 + $0x40] sm:$0xff]  ;;  %v237_v36 = vld [vmem:[%s1527_s26 + $0x38] sm:$0xff] }
  0x1a   : > { %1113 = vmatprep.subr.bf16.mxu1 %v1246_v14  ;;  %v245_v33 = vpack.c.bf16 %v238_v32, %v231_v31  ;;  %v230_v35 = vld [vmem:[%s1527_s26] sm:$0xff]  ;;  %v233_v39 = vld [vmem:[%s1527_s26 + $0x18] sm:$0xff]  ;;  %v240_v40 = vld [vmem:[%s1527_s26 + $0x50] sm:$0xff] }
  0x1b   : > { %1092 = vmatpush3.bf16.msra.mxu0 %v1245_v13  ;;  %v244_v37 = vpack.c.bf16 %v237_v36, %v230_v35  ;;  %v247_v41 = vpack.c.bf16 %v240_v40, %v233_v39  ;;  %v232_v44 = vld [vmem:[%s1527_s26 + $0x10] sm:$0xff]  ;;  %v239_v45 = vld [vmem:[%s1527_s26 + $0x48] sm:$0xff]  ;;  %v1270_v51 = vld [vmem:[%s1697_s1 + $0x158] sm:$0xff]  }
  0x1c   : > { %1093 = vmatprep.subr.bf16.mxu0 %v1248_v16  ;;  %686 = vmatprep.mubr.bf16.mxu0 %v245_v33  ;;  %v246_v46 = vpack.c.bf16 %v239_v45, %v232_v44  ;;  %v1268_v49 = vld [vmem:[%s1697_s1 + $0x150] sm:$0xff]   ;;  %v1271_v52 = vld [vmem:[%s1697_s1 + $0x118] sm:$0xff]   ;;  %v1272_v53 = vld [vmem:[%s1697_s1 + $0x160] sm:$0xff]  }
  0x1d   : > { %1114 = vmatpush3.bf16.msra.mxu1 %v1247_v15  ;;  %727 = vmatprep.mubr.bf16.mxu1 %v247_v41  ;;  %v1269_v50 = vld [vmem:[%s1697_s1 + $0x110] sm:$0xff]   ;;  %v1273_v54 = vld [vmem:[%s1697_s1 + $0x120] sm:$0xff]   ;;  %v1274_v55 = vld [vmem:[%s1697_s1 + $0x168] sm:$0xff]  }
  0x1e   : > { %1115 = vmatprep.subr.bf16.mxu1 %v1250_v18  ;;  %v1280_v56 = vld [vmem:[%s1697_s1 + $0x180] sm:$0xff]   ;;  %v235_v57 = vld [vmem:[%s1527_s26 + $0x28] sm:$0xff]  ;;  %v1276_v59 = vld [vmem:[%s1697_s1 + $0x170] sm:$0xff]  }
  0x1f   : > { %1094 = vmatpush3.bf16.msra.mxu0 %v1249_v17  ;;  %v1275_v58 = vld [vmem:[%s1697_s1 + $0x128] sm:$0xff]   ;;  %v242_v60 = vld [vmem:[%s1527_s26 + $0x60] sm:$0xff]  ;;  %v236_v62 = vld [vmem:[%s1527_s26 + $0x30] sm:$0xff] }
  0x20   : > { %1095 = vmatprep.subr.bf16.mxu0 %v1252_v20  ;;  %v249_v61 = vpack.c.bf16 %v242_v60, %v235_v57  ;;  %v243_v63 = vld [vmem:[%s1527_s26 + $0x68] sm:$0xff]  ;;  %v1277_v1 = vld [vmem:[%s1697_s1 + $0x130] sm:$0xff]   ;;  %v1278_v2 = vld [vmem:[%s1697_s1 + $0x178] sm:$0xff]  }
  0x21   : > { %1116 = vmatpush3.bf16.msra.mxu1 %v1251_v19  ;;  %v250_v0 = vpack.c.bf16 %v243_v63, %v236_v62  ;;  %v1279_v3 = vld [vmem:[%s1697_s1 + $0x138] sm:$0xff]   ;;  %v234_v4 = vld [vmem:[%s1527_s26 + $0x20] sm:$0xff]  ;;  %v1282_v8 = vld [vmem:[%s1699_s3 + $0x8] sm:$0xff]  }
  0x22   : > { %1117 = vmatprep.subr.bf16.mxu1 %v1254_v22  ;;  %v241_v5 = vld [vmem:[%s1527_s26 + $0x58] sm:$0xff]  ;;  %v1281_v7 = vld [vmem:[%s1699_s3] sm:$0xff]   ;;  %v1283_v9 = vld [vmem:[%s1699_s3 + $0x10] sm:$0xff]   ;;  %s220_s26 = scalar_lea.vmem [#allocation2], %s1016_s17 }
  0x23   : > { %1096 = vmatpush3.bf16.msra.mxu0 %v1253_v21  ;;  %v248_v6 = vpack.c.bf16 %v241_v5, %v234_v4  ;;  %v1284_v10 = vld [vmem:[%s1699_s3 + $0x18] sm:$0xff]   ;;  %v1285_v11 = vld [vmem:[%s1699_s3 + $0x20] sm:$0xff]   ;;  %v1286_v12 = vld [vmem:[%s1699_s3 + $0x28] sm:$0xff]   ;;  %s950_s6 = sshll.u32 %s220_s26, 4  ;;  %s1648_s6 = int_to_ptr.vmem [resolvable:$true] %s950_s6 }
  0x24   : > { %1097 = vmatprep.subr.bf16.mxu0 %v1256_v24  ;;  %v1287_v13 = vld [vmem:[%s1699_s3 + $0x30] sm:$0xff]   ;;  %v1288_v14 = vld [vmem:[%s1699_s3 + $0x38] sm:$0xff]   ;;  %v1019_v16 = vld [vmem:[%s1698_s2] ss:$0 sm:$0xff]  ;;  %s1289_s22 = scalar_lea.vmem %s1648_s6, 256  ;;  %p1296_p0 = scmp.lt.s32.totalorder %s1648_s6, %s1294_s13 }
  0x25   : > { %1118 = vmatpush3.bf16.msra.mxu1 %v1255_v23  ;;  %p1290_p11 = scmp.ne.s32.totalorder %s1648_s6, %s1289_s22  ;;  %p1297_p1 = scmp.lt.s32.totalorder %s1295_s14, %s1289_s22 }
  0x26   : > { %1119 = vmatprep.subr.bf16.mxu1 %v1258_v26 }
  0x27   : > { %1098 = vmatpush3.bf16.msra.mxu0 %v1257_v25  ;;  %p1291_p12 = pnand %p1290_p11, %p1426_p5  ;;  %p1298_p2 = por %p1297_p1, %p1296_p0 }
  0x28   : > { %1099 = vmatprep.subr.bf16.mxu0 %v1260_v28 }
  0x29   : > { %1120 = vmatpush3.bf16.msra.mxu1 %v1259_v27  ;;  %p1292_p13 = pneg %p1291_p12 }
  0x2a   : > { %1121 = vmatprep.subr.bf16.mxu1 %v1262_v30 }
  0x2b   : > { %1100 = vmatpush3.bf16.msra.mxu0 %v1261_v29  ;;  %p1299_p3 = pnand %p1298_p2, %p1292_p13 }
  0x2c   : > { %1129 = vmatprep.subr.bf16.mxu0 %v1264_v38 }
  0x2d   : > { %1122 = vmatpush3.bf16.msra.mxu1 %v1263_v34 }
  0x2e   : > { %1162 = vmatprep.subr.bf16.mxu1 %v1353_v43  ;;  %687 = vmatmul.mubr.bf16.vlgmr.msra.gmra.mrb[0].mxu0 %v244_v37 }
  0x2f   : > { %1130 = vmatpush3.bf16.msra.mxu0 %v1265_v42  ;;  %768 = vmatprep.mubr.bf16.mxu0 %v249_v61 }
  0x30   : > { %728 = vmatmul.mubr.bf16.vlgmr.msra.gmra.mrb[0].mxu1 %v246_v46  ;;  %1131 = vmatprep.subr.bf16.mxu0 %v1266_v47 }
  0x31   : > { %1164 = vmatprep.mubr.msk.bf16.mxu1 %vm1354_vm0, %v1353_v43  ;;  %1163 = vmatpush3.bf16.msra.mxu1 %v1280_v56 }
  0x32   : > { %1168 = vmatprep.subr.bf16.mxu1 %v1353_v43 }
  0x33   : > { %1132 = vmatpush3.bf16.msra.mxu0 %v1267_v48 }
  0x34   : > { %1133 = vmatprep.subr.bf16.mxu0 %v1268_v49  ;;  %v1070_v49 = vld [vmem:[%s1700_s4] ss:$0 sm:$0xff] }
  0x37   : > { %1134 = vmatpush3.bf16.msra.mxu0 %v1269_v50 }
  0x38   : > { %1135 = vmatprep.subr.bf16.mxu0 %v1270_v51  ;;  %1165 = vmatmul.mubr.msk.bf16.vlgmr.msra.gmra.mrb[4].mxu1 %vm650_vm1, %v250_v0 }
  0x39   : > { %1184 = vmatprep.mubr.msk.bf16.mxu1 %vm1354_vm0, %v1353_v43  ;;  %1169 = vmatpush3.bf16.msra.mxu1 %v1281_v7 }
  0x3a   : > { %1170 = vmatprep.subr.bf16.mxu1 %v1353_v43 }
  0x3b   : > { %1136 = vmatpush3.bf16.msra.mxu0 %v1271_v52 }
  0x3c   : > { %1137 = vmatprep.subr.bf16.mxu0 %v1272_v53 }
  0x3d   : > { %1171 = vmatpush3.bf16.msra.mxu1 %v1282_v8 }
  0x3e   : > { %1172 = vmatprep.subr.bf16.mxu1 %v1353_v43 }
  0x3f   : > { %1138 = vmatpush3.bf16.msra.mxu0 %v1273_v54 }
  0x40   : > { %1139 = vmatprep.subr.bf16.mxu0 %v1274_v55 }
  0x41   : > { %1173 = vmatpush3.bf16.msra.mxu1 %v1283_v9 }
  0x42   : > { %1174 = vmatprep.subr.bf16.mxu1 %v1353_v43 }
  0x43   : > { %1140 = vmatpush3.bf16.msra.mxu0 %v1275_v58 }
  0x44   : > { %1141 = vmatprep.subr.bf16.mxu0 %v1276_v59 }
  0x45   : > { %1175 = vmatpush3.bf16.msra.mxu1 %v1284_v10 }
  0x46   : > { %1176 = vmatprep.subr.bf16.mxu1 %v1353_v43 }
  0x47   : > { %1142 = vmatpush3.bf16.msra.mxu0 %v1277_v1 }
  0x48   : > { %1143 = vmatprep.subr.bf16.mxu0 %v1278_v2 }
  0x49   : > { %1177 = vmatpush3.bf16.msra.mxu1 %v1285_v11 }
  0x4a   : > { %1178 = vmatprep.subr.bf16.mxu1 %v1353_v43 }
  0x4b   : > { %1144 = vmatpush3.bf16.msra.mxu0 %v1279_v3 }
  0x4d   : > { %1179 = vmatpush3.bf16.msra.mxu1 %v1286_v12 }
  0x4e   : > { %769 = vmatmul.mubr.bf16.vlgmr.msra.gmra.mrb[4].mxu0 %v248_v6  ;;  %1180 = vmatprep.subr.bf16.mxu1 %v1353_v43 }
  0x51   : > { %1181 = vmatpush3.bf16.msra.mxu1 %v1287_v13 }
  0x52   : > { %1182 = vmatprep.subr.bf16.mxu1 %v1353_v43 }
  0x55   : > { %1183 = vmatpush3.bf16.msra.mxu1 %v1288_v14 }
 0x101   : > { %v1101_v15 = vpop.f32.mrb[0].mxu0 }
 0x102   : > { %v1102_v17 = vpop.f32.mrb[1].mxu0 }
 0x103   : > { %v1103_v18 = vadd.f32 %v1102_v17, %v1101_v15  ;;  %v1104_v19 = vpop.f32.mrb[2].mxu0  ;;  %v1123_v20 = vpop.f32.mrb[0].mxu1 }
 0x104   : > { %v1105_v21 = vpop.f32.mrb[3].mxu0  ;;  %v1124_v24 = vpop.f32.mrb[1].mxu1 }
 0x105   : > { %v689_v22 = vadd.f32 %v1103_v18, %v1019_v16  ;;  %v1106_v23 = vadd.f32 %v1105_v21, %v1104_v19  ;;  %v1125_v25 = vadd.f32 %v1124_v24, %v1123_v20  ;;  %v1126_v26 = vpop.f32.mrb[2].mxu1 }
 0x106   : > { %v1127_v28 = vpop.f32.mrb[3].mxu1 }
 0x107   : > { %v692_v27 = vadd.f32 %v1106_v23, %v1019_v16  ;;  %v730_v29 = vadd.f32 %v1125_v25, %v689_v22  ;;  %v1128_v30 = vadd.f32 %v1127_v28, %v1126_v26 }
 0x109   : > { %v733_v31 = vadd.f32 %v1128_v30, %v692_v27 }
 0x10b   : > { %v811_v32 = vpop.f32.mrb[4].mxu1 }
 0x10c   : > { %v1166_v33 = vpop.f32.mrb[5].mxu1 }
 0x10d   : > { %v814_v34 = vpop.f32.mrb[6].mxu1 }
 0x10e   : > { %v1167_v35 = vpop.f32.mrb[7].mxu1 }
 0x121   : > { %v1145_v36 = vpop.f32.mrb[4].mxu0 }
 0x122   : > { %v1146_v37 = vpop.f32.mrb[5].mxu0 }
 0x123   : > { %v1147_v38 = vadd.f32 %v1146_v37, %v1145_v36  ;;  %v1148_v39 = vpop.f32.mrb[6].mxu0 }
 0x124   : > { %v1149_v40 = vpop.f32.mrb[7].mxu0 }
 0x125   : > { %v771_v41 = vadd.f32 %v1147_v38, %v730_v29  ;;  %v1150_v42 = vadd.f32 %v1149_v40, %v1148_v39 }
 0x127   : > { %v812_v43 = vadd.f32 %v811_v32, %v771_v41  ;;  %v774_v44 = vadd.f32 %v1150_v42, %v733_v31 }
 0x129   : > { %v815_v45 = vadd.f32 %v814_v34, %v774_v44  ;;  %v818_v46 = vmax.f32 %v812_v43, 0.0 }
 0x12b   : > { %v819_v47 = vmax.f32 %v815_v45, 0.0 }
 0x12d   : > { %v820_v48 = vpack.c.bf16 %v819_v47, %v818_v46 }
 0x12f   : > { %1185 = vmatmul.mubr.bf16.vlgmr.msra.gmra.mrb[8].mxu1 %v820_v48 }
 0x202   : > { %v926_v50 = vpop.f32.mrb[8].mxu1 }
 0x203   : > { %v927_v51 = vadd.f32 %v1070_v49, %v926_v50  ;;  %v1186_v52 = vpop.f32.mrb[9].mxu1 }
 0x204   : > { %v929_v53 = vpop.f32.mrb[10].mxu1 }
 0x205   : > { %934 = vst.msk [vmem:[%s220_s26] sm:$0xff] %vm933_vm2, %v927_v51  ;;  %v930_v54 = vadd.f32 %v1070_v49, %v929_v53  ;;  %v1187_v55 = vpop.f32.mrb[11].mxu1 }
 0x207   : > { %935 = vst.msk [vmem:[%s220_s26 + $0x8] sm:$0xff] %vm933_vm2, %v930_v54 }
 0x208   : > { %1302 = shalt.err (!%p1299_p3)
}
 0x209   : > { %s1303_s15 = scalar_lea.hbm %s1653_s10, 256  ;;  %s1307_s17 = scalar_lea.hbm %s1701_s5, 512 }
 0x20a   : > { %p1304_p4 = scmp.ne.s32.totalorder %s1653_s10, %s1303_s15  ;;  %p1308_p9 = scmp.lt.u32.totalorder %s1653_s10, %s1701_s5 }
 0x20b   : > { %p1309_p10 = scmp.lt.u32.totalorder %s1307_s17, %s1303_s15  ;;  %p1311_p12 = scmp.lt.u32.totalorder %s1303_s15, %s1653_s10 }
 0x20c   : > { %p1305_p7 = pnand %p1304_p4, %p1426_p5 }
 0x20d   : > { %p1310_p11 = por %p1309_p10, %p1308_p9 }
 0x20e   : > { %p1306_p8 = pneg %p1305_p7 }
 0x20f   : > { %p1312_p13 = por %p1311_p12, %p1310_p11 }
 0x211   : > { %p1313_p0 = pnand %p1312_p13, %p1306_p8 }
 0x213   : > { %1316 = shalt.err (!%p1313_p0)
}
 0x214   : > { %s1356_s26 = smov 128   ;;  %s1357_s7 = smov 8  }
 0x215   : > { %1189 = dma.vmem_to_hbm [thread:$0]  (%p1426_p5), %s1648_s6, 256, %s1653_s10, %s1655_s11, %s1356_s26, %s1356_s26, %s1357_s7  }
 0x216 PF: > { %p1195_p1 = scmp.ge.s32.totalorder %s1351_s21, 2  ;;  %s965_s8 = sand.u32 1, %s1339_s18  }
 0x217   : > { %s966_s9 = scalar_lea.sflag [#allocation3], %s965_s8 }
 0x218   : > { %p1192_p2 = pnand %p1195_p1, %p1430_p6 }
 0x21a   : > { %1334 = dma.done.wait (!%p1192_p2), %s966_s9, 256  }
 0x21b   : > { %1336 = vsyncadd (!%p1192_p2), %s966_s9, 4294967040  ;;  %p15_p3 = scmp.ge.s32.totalorder %s1413_s24, 4   ;;  %s1704_s18 = smov %s1343_s19 }
 0x21c   : > { %s1705_s19 = smov %s1347_s20  ;;  %s1706_s20 = smov %s1424_s27 }
 0x21d   : > { %s1707_s21 = smov %s1413_s24  ;;  %17 = sbr.rel (!%p15_p3) target bundleno = 3 (0x3), region = 75 }
 0x224   :  { %971 = vsyncpa [#allocation3], 1 }
 0x225   :  { %973 = vsyncpa [#allocation3 + $0x1], 1 }

</bundles_post_ra>
